<compile_context>
chip_gen: v7x
topology: tpu7x:2x2x1
jax: 0.10.0
libtpu: 0.0.40
codegen_flags: <defaults>
</compile_context>

<pallas_src>
import functools

import jax
import jax.numpy as jnp
from jax.experimental import pallas as pl
from jax.experimental.pallas import tpu as pltpu


def _ghost_conv_kernel(x_ref, w_ref, b_ref, *rest, K, P, W, HW, BN):
    """BN images per grid step, per-tap accumulating matmuls (no im2col buffer).

    x_ref: (BN, C1, HW)    inputs; channels on sublanes, H*W lane-dense
    w_ref: (K*K, C2, C1)   BN-scale-folded per-tap weights (compute_dtype)
    b_ref: (C2, 1) f32     folded BN bias
    m_ref: (K*K, HW)       0/1 border masks in compute_dtype (only when K > 1)
    o_ref: (BN, C2, HW)    outputs, lane-dense
    """
    if K > 1:
        m_ref, o_ref = rest
    else:
        (o_ref,) = rest
        m_ref = None

    for b in range(BN):                               # static unroll over images
        x = x_ref[b]                                  # (C1, HW)
        acc = None
        t = 0
        for kh in range(K):
            for kw in range(K):
                dh, dw = kh - P, kw - P
                off = dh * W + dw                     # static flat shift
                # pltpu.roll follows jnp.roll's sign convention (positive shift
                # moves data toward higher lane indices), so tap[p] = x[p + off]
                # needs shift = (-off) % HW.  Valid only because each block
                # holds whole images on the lane axis (tile width == HW).
                tap = x if off == 0 else pltpu.roll(x, (-off) % HW, axis=1)
                if m_ref is not None and (dh != 0 or dw != 0):
                    # 0/1 halo mask; lane-only, broadcasts over channels.
                    tap = tap * m_ref[t:t + 1, :]
                d = jnp.dot(w_ref[t], tap, preferred_element_type=jnp.float32)
                acc = d if acc is None else acc + d
                t += 1
        y = acc + b_ref[...]                          # folded BN bias (f32)
        y = jnp.where(y > 0, y, 0.1 * y)              # LeakyReLU(0.1)
        o_ref[b] = y.astype(o_ref.dtype)              # full-lane store


def _per_step_vmem_bytes(bn, C1, C2, HW, in_bytes, out_bytes):
    # double-buffered in/out tiles + f32 working accumulator (rough estimate)
    return (2 * bn * C1 * HW * in_bytes
            + 2 * bn * C2 * HW * out_bytes
            + 2 * C2 * HW * 4)


def _pick_block_images(N, C1, C2, HW, in_bytes, out_bytes, budget=40 << 20):
    """Largest divisor of N that fits the VMEM budget and keeps >=2 grid steps."""
    best = 1
    for bn in range(1, N + 1):
        if N % bn:
            continue
        if _per_step_vmem_bytes(bn, C1, C2, HW, in_bytes, out_bytes) > budget:
            break
        if N // bn >= 2 or N == 1:
            best = bn
    return best


def ghost_base_conv(x_nchw, weight_oihw, gamma, beta, running_mean,
                    running_var, *, k=1, s=1, p=None, eps=1e-5,
                    compute_dtype=jnp.float32, out_dtype=None,
                    block_images=None):
    """Eval-mode forward of GhostBaseConv (conv -> BN -> LeakyReLU(0.1)).

    x_nchw:      (N, C1, H, W)  float32
    weight_oihw: (C2, C1, k, k) float32 (PyTorch conv weight layout)
    returns:     (N, C2, H, W)  out_dtype (default: compute_dtype)
    """
    if p is None:
        p = k // 2
    assert s == 1, "only stride=1 implemented"       # TODO(synk): stride > 1
    assert k % 2 == 1 and p == k // 2, "only 'same' padding (odd k, p=k//2)"
    # TODO(synk): groups > 1 and act=False variants not implemented.
    # TODO(synk): training-mode BatchNorm (running-stat update) not implemented.

    N, C1, H, W = x_nchw.shape
    C2 = weight_oihw.shape[0]
    HW = H * W
    if out_dtype is None:
        out_dtype = compute_dtype
    in_bytes = jnp.dtype(compute_dtype).itemsize
    out_bytes = jnp.dtype(out_dtype).itemsize

    # ---- wrapper-side algebra (tiny, no big relayout ops) -------------------
    # BN (eval) fold: scale into the weights, bias stays for the epilogue.
    scale = gamma / jnp.sqrt(running_var + eps)                        # (C2,)
    bias = (beta - running_mean * scale).astype(jnp.float32).reshape(C2, 1)

    # (C2,C1,K,K) -> (K,K,C2,C1) -> (K*K, C2, C1); row t = kh*K + kw matches
    # the kernel's tap loop order.
    w_taps = jnp.transpose(weight_oihw, (2, 3, 0, 1)).reshape(k * k, C2, C1)
    w_taps = (w_taps * scale[None, :, None]).astype(compute_dtype)

    # NCHW kept; flattening (H, W) is a free reshape (no transpose, no pad).
    x_flat = x_nchw.reshape(N, C1, HW).astype(compute_dtype)

    # Per-tap 0/1 halo masks, lane-only (depend on (h, w), not channel/image).
    operands = [x_flat, w_taps, bias]
    if k > 1:
        hh = jnp.arange(H, dtype=jnp.int32)[:, None]
        ww = jnp.arange(W, dtype=jnp.int32)[None, :]
        mask_rows = []
        for kh in range(k):
            for kw in range(k):
                dh, dw = kh - p, kw - p
                valid = ((hh + dh >= 0) & (hh + dh < H)
                         & (ww + dw >= 0) & (ww + dw < W))
                mask_rows.append(valid.reshape(HW))
        masks = jnp.stack(mask_rows, axis=0).astype(compute_dtype)  # (K*K, HW)
        operands.append(masks)

    # Batch images per grid step (amortize per-step pipeline overhead).
    if block_images is None:
        BN = _pick_block_images(N, C1, C2, HW, in_bytes, out_bytes)
    else:
        BN = block_images
        assert N % BN == 0, "block_images must divide N"
    grid = (N // BN,)

    in_specs = [
        pl.BlockSpec((BN, C1, HW), lambda n: (n, 0, 0)),
        pl.BlockSpec((k * k, C2, C1), lambda n: (0, 0, 0)),
        pl.BlockSpec((C2, 1), lambda n: (0, 0)),
    ]
    if k > 1:
        in_specs.append(pl.BlockSpec((k * k, HW), lambda n: (0, 0)))

    vmem_limit = int(min(64 << 20,
                         max(32 << 20,
                             2 * _per_step_vmem_bytes(BN, C1, C2, HW,
                                                      in_bytes, out_bytes))))

    kernel = functools.partial(_ghost_conv_kernel, K=k, P=p, W=W, HW=HW, BN=BN)

    # TODO(synk): for very large C*H*W feature maps add a row-tile grid axis
    # with an input halo (whole rows per tile) so one image need not fit VMEM.
    out = pl.pallas_call(
        kernel,
        out_shape=jax.ShapeDtypeStruct((N, C2, HW), out_dtype),
        grid_spec=pltpu.PrefetchScalarGridSpec(
            num_scalar_prefetch=0,
            grid=grid,
            in_specs=in_specs,
            out_specs=pl.BlockSpec((BN, C2, HW), lambda n: (n, 0, 0)),
        ),
        compiler_params=pltpu.CompilerParams(
            dimension_semantics=("parallel",),
            vmem_limit_bytes=vmem_limit),
    )(*operands)

    return out.reshape(N, C2, H, W)                  # free reshape (still NCHW)


def _reference(x_nchw, weight_oihw, gamma, beta, mean, var, *, p, eps=1e-5):
    y = jax.lax.conv_general_dilated(
        x_nchw, weight_oihw, window_strides=(1, 1),
        padding=((p, p), (p, p)),
        dimension_numbers=("NCHW", "OIHW", "NCHW"))
    scale = (gamma / jnp.sqrt(var + eps)).reshape(1, -1, 1, 1)
    bias = (beta - mean * gamma / jnp.sqrt(var + eps)).reshape(1, -1, 1, 1)
    y = y * scale + bias
    return jnp.where(y > 0, y, 0.1 * y)


if __name__ == "__main__":
    # small shapes consistent with the module: GhostBaseConv(c1=4, c2=8, k=3)
    N, C1, C2, H, W, K = 2, 4, 8, 16, 16, 3
    P = K // 2

    key = jax.random.PRNGKey(0)
    kx, kw, kg, kb, km, kv, k1 = jax.random.split(key, 7)

    x = jax.random.normal(kx, (N, C1, H, W), dtype=jnp.float32)
    weight = jax.random.normal(kw, (C2, C1, K, K), dtype=jnp.float32) * 0.1
    gamma = jax.random.normal(kg, (C2,), dtype=jnp.float32) * 0.1 + 1.0
    beta = jax.random.normal(kb, (C2,), dtype=jnp.float32) * 0.1
    running_mean = jax.random.normal(km, (C2,), dtype=jnp.float32) * 0.1
    running_var = jax.random.uniform(kv, (C2,), dtype=jnp.float32,
                                     minval=0.5, maxval=1.5)

    ref = _reference(x, weight, gamma, beta, running_mean, running_var, p=P)

    # f32 path (tight check of roll/mask halo + per-tap accumulation).
    out = ghost_base_conv(x, weight, gamma, beta, running_mean, running_var,
                          k=K, s=1, p=P)
    out = jax.block_until_ready(out)
    assert out.shape == (N, C2, H, W), out.shape
    assert jnp.allclose(out, ref, atol=1e-4, rtol=1e-4), (
        float(jnp.max(jnp.abs(out - ref))))

    # bf16 compute AND bf16 output (halves HBM writeback); f32 accumulation.
    out_bf16 = ghost_base_conv(x, weight, gamma, beta, running_mean,
                               running_var, k=K, s=1, p=P,
                               compute_dtype=jnp.bfloat16)
    out_bf16 = jax.block_until_ready(out_bf16)
    assert out_bf16.dtype == jnp.bfloat16
    assert jnp.allclose(out_bf16.astype(jnp.float32), ref,
                        atol=1e-1, rtol=1e-1), (
        float(jnp.max(jnp.abs(out_bf16.astype(jnp.float32) - ref))))

    # k=1 (the module's default): no masks operand, no rolls, single tap.
    weight1 = jax.random.normal(k1, (C2, C1, 1, 1), dtype=jnp.float32) * 0.1
    ref1 = _reference(x, weight1, gamma, beta, running_mean, running_var, p=0)
    out1 = ghost_base_conv(x, weight1, gamma, beta, running_mean, running_var,
                           k=1, s=1)
    out1 = jax.block_until_ready(out1)
    assert jnp.allclose(out1, ref1, atol=1e-4, rtol=1e-4), (
        float(jnp.max(jnp.abs(out1 - ref1))))

    # N=4 exercises the batched path (block_images auto-picks 2 -> grid of 2).
    x4 = jax.random.normal(kx, (4, C1, H, W), dtype=jnp.float32)
    ref4 = _reference(x4, weight, gamma, beta, running_mean, running_var, p=P)
    out4 = ghost_base_conv(x4, weight, gamma, beta, running_mean, running_var,
                           k=K, s=1, p=P)
    out4 = jax.block_until_ready(out4)
    assert jnp.allclose(out4, ref4, atol=1e-4, rtol=1e-4), (
        float(jnp.max(jnp.abs(out4 - ref4))))

    print("KERNEL_OK")
</pallas_src>

<mosaic_0001>
module attributes {stable_mosaic.version = 11 : i64} {
  func.func @_ghost_conv_kernel(%arg0: i32, %arg1: memref<1x4x256xf32, #tpu.memory_space<vmem>>, %arg2: memref<9x8x4xf32, #tpu.memory_space<vmem>>, %arg3: memref<8x1xf32, #tpu.memory_space<vmem>>, %arg4: memref<9x256xf32, #tpu.memory_space<vmem>>, %arg5: memref<1x8x256xf32, #tpu.memory_space<vmem>>) attributes {dimension_semantics = [#tpu.dimension_semantics<parallel>], iteration_bounds = array<i64: 2>, scalar_prefetch = 0 : i64, scratch_operands = 0 : i64, tpu.core_type = #tpu.core_type<tc>, window_params = [{transform_indices = @transform_0, window_bounds = array<i64: 1, 4, 256>}, {pipeline_mode = #tpu.pipeline_mode<synchronous>, transform_indices = @transform_1, window_bounds = array<i64: 9, 8, 4>}, {pipeline_mode = #tpu.pipeline_mode<synchronous>, transform_indices = @transform_2, window_bounds = array<i64: 8, 1>}, {pipeline_mode = #tpu.pipeline_mode<synchronous>, transform_indices = @transform_3, window_bounds = array<i64: 9, 256>}, {transform_indices = @transform_4, window_bounds = array<i64: 1, 8, 256>}]} {
    %c0 = arith.constant 0 : index
    %c0_0 = arith.constant 0 : index
    %c0_1 = arith.constant 0 : index
    %0 = vector.load %arg1[%c0, %c0_0, %c0_1] : memref<1x4x256xf32, #tpu.memory_space<vmem>>, vector<1x4x256xf32>
    %1 = vector.shape_cast %0 : vector<1x4x256xf32> to vector<4x256xf32>
    %c17_i32 = arith.constant 17 : i32
    %2 = tpu.dynamic_rotate %1 by %c17_i32 dim 1 : vector<4x256xf32>, i32 -> vector<4x256xf32>
    %c0_2 = arith.constant 0 : index
    %c0_3 = arith.constant 0 : index
    %3 = vector.load %arg4[%c0_2, %c0_3] : memref<9x256xf32, #tpu.memory_space<vmem>>, vector<1x256xf32>
    %4 = vector.broadcast %3 : vector<1x256xf32> to vector<4x256xf32>
    %5 = arith.mulf %2, %4 : vector<4x256xf32>
    %c0_4 = arith.constant 0 : index
    %c0_5 = arith.constant 0 : index
    %c0_6 = arith.constant 0 : index
    %6 = vector.load %arg2[%c0_4, %c0_5, %c0_6] : memref<9x8x4xf32, #tpu.memory_space<vmem>>, vector<1x8x4xf32>
    %7 = vector.shape_cast %6 : vector<1x8x4xf32> to vector<8x4xf32>
    %cst = arith.constant dense<0.000000e+00> : vector<8x256xf32>
    %8 = tpu.matmul %7, %5, %cst {dimension_numbers = #tpu.dot_dimension_numbers<[1], [0], [0], [1], [0, 0, 1, 1], [], []>} : vector<8x4xf32>, vector<4x256xf32>, vector<8x256xf32> -> vector<8x256xf32>
    %c16_i32 = arith.constant 16 : i32
    %9 = tpu.dynamic_rotate %1 by %c16_i32 dim 1 : vector<4x256xf32>, i32 -> vector<4x256xf32>
    %c1 = arith.constant 1 : index
    %c0_7 = arith.constant 0 : index
    %10 = vector.load %arg4[%c1, %c0_7] : memref<9x256xf32, #tpu.memory_space<vmem>>, vector<1x256xf32>
    %11 = vector.broadcast %10 : vector<1x256xf32> to vector<4x256xf32>
    %12 = arith.mulf %9, %11 : vector<4x256xf32>
    %c1_8 = arith.constant 1 : index
    %c0_9 = arith.constant 0 : index
    %c0_10 = arith.constant 0 : index
    %13 = vector.load %arg2[%c1_8, %c0_9, %c0_10] : memref<9x8x4xf32, #tpu.memory_space<vmem>>, vector<1x8x4xf32>
    %14 = vector.shape_cast %13 : vector<1x8x4xf32> to vector<8x4xf32>
    %cst_11 = arith.constant dense<0.000000e+00> : vector<8x256xf32>
    %15 = tpu.matmul %14, %12, %cst_11 {dimension_numbers = #tpu.dot_dimension_numbers<[1], [0], [0], [1], [0, 0, 1, 1], [], []>} : vector<8x4xf32>, vector<4x256xf32>, vector<8x256xf32> -> vector<8x256xf32>
    %16 = arith.addf %8, %15 : vector<8x256xf32>
    %c15_i32 = arith.constant 15 : i32
    %17 = tpu.dynamic_rotate %1 by %c15_i32 dim 1 : vector<4x256xf32>, i32 -> vector<4x256xf32>
    %c2 = arith.constant 2 : index
    %c0_12 = arith.constant 0 : index
    %18 = vector.load %arg4[%c2, %c0_12] : memref<9x256xf32, #tpu.memory_space<vmem>>, vector<1x256xf32>
    %19 = vector.broadcast %18 : vector<1x256xf32> to vector<4x256xf32>
    %20 = arith.mulf %17, %19 : vector<4x256xf32>
    %c2_13 = arith.constant 2 : index
    %c0_14 = arith.constant 0 : index
    %c0_15 = arith.constant 0 : index
    %21 = vector.load %arg2[%c2_13, %c0_14, %c0_15] : memref<9x8x4xf32, #tpu.memory_space<vmem>>, vector<1x8x4xf32>
    %22 = vector.shape_cast %21 : vector<1x8x4xf32> to vector<8x4xf32>
    %cst_16 = arith.constant dense<0.000000e+00> : vector<8x256xf32>
    %23 = tpu.matmul %22, %20, %cst_16 {dimension_numbers = #tpu.dot_dimension_numbers<[1], [0], [0], [1], [0, 0, 1, 1], [], []>} : vector<8x4xf32>, vector<4x256xf32>, vector<8x256xf32> -> vector<8x256xf32>
    %24 = arith.addf %16, %23 : vector<8x256xf32>
    %c1_i32 = arith.constant 1 : i32
    %25 = tpu.dynamic_rotate %1 by %c1_i32 dim 1 : vector<4x256xf32>, i32 -> vector<4x256xf32>
    %c3 = arith.constant 3 : index
    %c0_17 = arith.constant 0 : index
    %26 = vector.load %arg4[%c3, %c0_17] : memref<9x256xf32, #tpu.memory_space<vmem>>, vector<1x256xf32>
    %27 = vector.broadcast %26 : vector<1x256xf32> to vector<4x256xf32>
    %28 = arith.mulf %25, %27 : vector<4x256xf32>
    %c3_18 = arith.constant 3 : index
    %c0_19 = arith.constant 0 : index
    %c0_20 = arith.constant 0 : index
    %29 = vector.load %arg2[%c3_18, %c0_19, %c0_20] : memref<9x8x4xf32, #tpu.memory_space<vmem>>, vector<1x8x4xf32>
    %30 = vector.shape_cast %29 : vector<1x8x4xf32> to vector<8x4xf32>
    %cst_21 = arith.constant dense<0.000000e+00> : vector<8x256xf32>
    %31 = tpu.matmul %30, %28, %cst_21 {dimension_numbers = #tpu.dot_dimension_numbers<[1], [0], [0], [1], [0, 0, 1, 1], [], []>} : vector<8x4xf32>, vector<4x256xf32>, vector<8x256xf32> -> vector<8x256xf32>
    %32 = arith.addf %24, %31 : vector<8x256xf32>
    %c4 = arith.constant 4 : index
    %c0_22 = arith.constant 0 : index
    %c0_23 = arith.constant 0 : index
    %33 = vector.load %arg2[%c4, %c0_22, %c0_23] : memref<9x8x4xf32, #tpu.memory_space<vmem>>, vector<1x8x4xf32>
    %34 = vector.shape_cast %33 : vector<1x8x4xf32> to vector<8x4xf32>
    %cst_24 = arith.constant dense<0.000000e+00> : vector<8x256xf32>
    %35 = tpu.matmul %34, %1, %cst_24 {dimension_numbers = #tpu.dot_dimension_numbers<[1], [0], [0], [1], [0, 0, 1, 1], [], []>} : vector<8x4xf32>, vector<4x256xf32>, vector<8x256xf32> -> vector<8x256xf32>
    %36 = arith.addf %32, %35 : vector<8x256xf32>
    %c255_i32 = arith.constant 255 : i32
    %37 = tpu.dynamic_rotate %1 by %c255_i32 dim 1 : vector<4x256xf32>, i32 -> vector<4x256xf32>
    %c5 = arith.constant 5 : index
    %c0_25 = arith.constant 0 : index
    %38 = vector.load %arg4[%c5, %c0_25] : memref<9x256xf32, #tpu.memory_space<vmem>>, vector<1x256xf32>
    %39 = vector.broadcast %38 : vector<1x256xf32> to vector<4x256xf32>
    %40 = arith.mulf %37, %39 : vector<4x256xf32>
    %c5_26 = arith.constant 5 : index
    %c0_27 = arith.constant 0 : index
    %c0_28 = arith.constant 0 : index
    %41 = vector.load %arg2[%c5_26, %c0_27, %c0_28] : memref<9x8x4xf32, #tpu.memory_space<vmem>>, vector<1x8x4xf32>
    %42 = vector.shape_cast %41 : vector<1x8x4xf32> to vector<8x4xf32>
    %cst_29 = arith.constant dense<0.000000e+00> : vector<8x256xf32>
    %43 = tpu.matmul %42, %40, %cst_29 {dimension_numbers = #tpu.dot_dimension_numbers<[1], [0], [0], [1], [0, 0, 1, 1], [], []>} : vector<8x4xf32>, vector<4x256xf32>, vector<8x256xf32> -> vector<8x256xf32>
    %44 = arith.addf %36, %43 : vector<8x256xf32>
    %c241_i32 = arith.constant 241 : i32
    %45 = tpu.dynamic_rotate %1 by %c241_i32 dim 1 : vector<4x256xf32>, i32 -> vector<4x256xf32>
    %c6 = arith.constant 6 : index
    %c0_30 = arith.constant 0 : index
    %46 = vector.load %arg4[%c6, %c0_30] : memref<9x256xf32, #tpu.memory_space<vmem>>, vector<1x256xf32>
    %47 = vector.broadcast %46 : vector<1x256xf32> to vector<4x256xf32>
    %48 = arith.mulf %45, %47 : vector<4x256xf32>
    %c6_31 = arith.constant 6 : index
    %c0_32 = arith.constant 0 : index
    %c0_33 = arith.constant 0 : index
    %49 = vector.load %arg2[%c6_31, %c0_32, %c0_33] : memref<9x8x4xf32, #tpu.memory_space<vmem>>, vector<1x8x4xf32>
    %50 = vector.shape_cast %49 : vector<1x8x4xf32> to vector<8x4xf32>
    %cst_34 = arith.constant dense<0.000000e+00> : vector<8x256xf32>
    %51 = tpu.matmul %50, %48, %cst_34 {dimension_numbers = #tpu.dot_dimension_numbers<[1], [0], [0], [1], [0, 0, 1, 1], [], []>} : vector<8x4xf32>, vector<4x256xf32>, vector<8x256xf32> -> vector<8x256xf32>
    %52 = arith.addf %44, %51 : vector<8x256xf32>
    %c240_i32 = arith.constant 240 : i32
    %53 = tpu.dynamic_rotate %1 by %c240_i32 dim 1 : vector<4x256xf32>, i32 -> vector<4x256xf32>
    %c7 = arith.constant 7 : index
    %c0_35 = arith.constant 0 : index
    %54 = vector.load %arg4[%c7, %c0_35] : memref<9x256xf32, #tpu.memory_space<vmem>>, vector<1x256xf32>
    %55 = vector.broadcast %54 : vector<1x256xf32> to vector<4x256xf32>
    %56 = arith.mulf %53, %55 : vector<4x256xf32>
    %c7_36 = arith.constant 7 : index
    %c0_37 = arith.constant 0 : index
    %c0_38 = arith.constant 0 : index
    %57 = vector.load %arg2[%c7_36, %c0_37, %c0_38] : memref<9x8x4xf32, #tpu.memory_space<vmem>>, vector<1x8x4xf32>
    %58 = vector.shape_cast %57 : vector<1x8x4xf32> to vector<8x4xf32>
    %cst_39 = arith.constant dense<0.000000e+00> : vector<8x256xf32>
    %59 = tpu.matmul %58, %56, %cst_39 {dimension_numbers = #tpu.dot_dimension_numbers<[1], [0], [0], [1], [0, 0, 1, 1], [], []>} : vector<8x4xf32>, vector<4x256xf32>, vector<8x256xf32> -> vector<8x256xf32>
    %60 = arith.addf %52, %59 : vector<8x256xf32>
    %c239_i32 = arith.constant 239 : i32
    %61 = tpu.dynamic_rotate %1 by %c239_i32 dim 1 : vector<4x256xf32>, i32 -> vector<4x256xf32>
    %c8 = arith.constant 8 : index
    %c0_40 = arith.constant 0 : index
    %62 = vector.load %arg4[%c8, %c0_40] : memref<9x256xf32, #tpu.memory_space<vmem>>, vector<1x256xf32>
    %63 = vector.broadcast %62 : vector<1x256xf32> to vector<4x256xf32>
    %64 = arith.mulf %61, %63 : vector<4x256xf32>
    %c8_41 = arith.constant 8 : index
    %c0_42 = arith.constant 0 : index
    %c0_43 = arith.constant 0 : index
    %65 = vector.load %arg2[%c8_41, %c0_42, %c0_43] : memref<9x8x4xf32, #tpu.memory_space<vmem>>, vector<1x8x4xf32>
    %66 = vector.shape_cast %65 : vector<1x8x4xf32> to vector<8x4xf32>
    %cst_44 = arith.constant dense<0.000000e+00> : vector<8x256xf32>
    %67 = tpu.matmul %66, %64, %cst_44 {dimension_numbers = #tpu.dot_dimension_numbers<[1], [0], [0], [1], [0, 0, 1, 1], [], []>} : vector<8x4xf32>, vector<4x256xf32>, vector<8x256xf32> -> vector<8x256xf32>
    %68 = arith.addf %60, %67 : vector<8x256xf32>
    %c0_45 = arith.constant 0 : index
    %c0_46 = arith.constant 0 : index
    %69 = vector.load %arg3[%c0_45, %c0_46] : memref<8x1xf32, #tpu.memory_space<vmem>>, vector<8x1xf32>
    %70 = vector.broadcast %69 : vector<8x1xf32> to vector<8x256xf32>
    %71 = arith.addf %68, %70 : vector<8x256xf32>
    %cst_47 = arith.constant 0.000000e+00 : f32
    %72 = vector.broadcast %cst_47 : f32 to vector<8x256xf32>
    %73 = arith.cmpf ogt, %71, %72 : vector<8x256xf32>
    %cst_48 = arith.constant 1.000000e-01 : f32
    %74 = vector.broadcast %cst_48 : f32 to vector<8x256xf32>
    %75 = arith.mulf %74, %71 : vector<8x256xf32>
    %76 = arith.select %73, %71, %75 : vector<8x256xi1>, vector<8x256xf32>
    %c0_49 = arith.constant 0 : index
    %c0_50 = arith.constant 0 : index
    %c0_51 = arith.constant 0 : index
    %77 = vector.load %arg5[%c0_49, %c0_50, %c0_51] : memref<1x8x256xf32, #tpu.memory_space<vmem>>, vector<1x8x256xf32>
    %78 = vector.shape_cast %77 : vector<1x8x256xf32> to vector<8x256xf32>
    %79 = vector.shape_cast %76 : vector<8x256xf32> to vector<1x8x256xf32>
    tpu.vector_store %arg5[%c0_49, %c0_50, %c0_51], %79 {strides = array<i32>} : memref<1x8x256xf32, #tpu.memory_space<vmem>>, vector<1x8x256xf32>,
    return
  }
  func.func @transform_0(%arg0: i32) -> (i32, i32, i32) {
    %c0_i32 = arith.constant 0 : i32
    %c0_i32_0 = arith.constant 0 : i32
    %c0_i32_1 = arith.constant 0 : i32
    return %arg0, %c0_i32, %c0_i32_0 : i32, i32, i32
  }
  func.func @transform_1(%arg0: i32) -> (i32, i32, i32) {
    %c0_i32 = arith.constant 0 : i32
    %c0_i32_0 = arith.constant 0 : i32
    %c0_i32_1 = arith.constant 0 : i32
    %c0_i32_2 = arith.constant 0 : i32
    return %c0_i32, %c0_i32_0, %c0_i32_1 : i32, i32, i32
  }
  func.func @transform_2(%arg0: i32) -> (i32, i32) {
    %c0_i32 = arith.constant 0 : i32
    %c0_i32_0 = arith.constant 0 : i32
    %c0_i32_1 = arith.constant 0 : i32
    return %c0_i32, %c0_i32_0 : i32, i32
  }
  func.func @transform_3(%arg0: i32) -> (i32, i32) {
    %c0_i32 = arith.constant 0 : i32
    %c0_i32_0 = arith.constant 0 : i32
    %c0_i32_1 = arith.constant 0 : i32
    return %c0_i32, %c0_i32_0 : i32, i32
  }
  func.func @transform_4(%arg0: i32) -> (i32, i32, i32) {
    %c0_i32 = arith.constant 0 : i32
    %c0_i32_0 = arith.constant 0 : i32
    %c0_i32_1 = arith.constant 0 : i32
    return %arg0, %c0_i32, %c0_i32_0 : i32, i32, i32
  }
}

</mosaic_0001>

<bundles_post_ra>
// kernel: tpu_custom_call.1
= control target key start
LH: loop header
LB: loop body
LE: loop exit
PB: predicated region body
PF: predicated region fallthrough
CT: control target
= control target key end

     0   :  { %9 = vsyncpa [#allocation3], 0  ;;  %s1665_s0 = inlined_call_operand.vmem [shape: f32[2,4,256], index: 0, kind: input, shape index: {}]   ;;  %s1666_s1 = inlined_call_operand.vmem [shape: f32[9,8,4], index: 1, kind: input, shape index: {}]   ;;  %s1667_s2 = inlined_call_operand.vmem [shape: f32[8,1], index: 2, kind: input, shape index: {}]   ;;  %s1668_s3 = inlined_call_operand.vmem [shape: f32[9,256], index: 3, kind: input, shape index: {}]   ;;  %s1669_s4 = inlined_call_operand.hbm [shape: f32[2,8,256], index: 4, kind: output, shape index: {}]  }
   0x1   :  { %11 = vsyncpa [#allocation3 + $0x1], 0  ;;  %s1441_s15 = smov 0   ;;  %s1443_s16 = smov 0  }
   0x2   :  { %s1445_s17 = smov 0   ;;  %s1447_s18 = smov 0  }
   0x3 LB: > { %s1462_s19 = sadd.s32 4294967295, %s1403_s18   ;;  %s1218_s20 = sadd.s32 4294967294, %s1403_s18   ;;  %s1403_s18 = sphi %s1447_s18, %s1675_s18   ;;  %s1399_s17 = sphi %s1445_s17, %s1674_s17   ;;  %s1395_s16 = sphi %s1443_s16, %s1673_s16   ;;  %s1391_s15 = sphi %s1441_s15, %s1672_s15  }
   0x4   : > { %s1466_s21 = sadd.s32 1, %s1403_s18   ;;  %s113_s22 = sadd.s32 1, %s1399_s17 }
   0x5   : > { %s110_s23 = ssub.s32 %s1403_s18, %s1466_s21  ;;  %p123_p0 = scmp.ne.s32.totalorder %s1399_s17, %s1395_s16 }
   0x6   : > { %p111_p1 = scmp.eq.s32.totalorder %s110_s23, 0  ;;  %p124_p2 = scmp.eq.s32.totalorder %s1462_s19, 1 }
   0x7   : > { %p129_p3 = scmp.ne.s32.totalorder %s1395_s16, %s1391_s15  ;;  %p130_p4 = scmp.eq.s32.totalorder %s1218_s20, 1 }
   0x8   : > { %s1477_s24 = scalar_select %p111_p1, %s1399_s17, %s113_s22  }
   0x9   : > { %p1479_p5 = por %p124_p2, %p123_p0  ;;  %p1483_p6 = por %p130_p4, %p129_p3 }
   0xa   : > { %p1221_p7 = scmp.ge.s32.totalorder %s1403_s18, 1  ;;  %p165_p8 = scmp.lt.s32.totalorder %s1403_s18, 3 }
   0xc   : > { %p166_p9 = pnand %p1221_p7, %p165_p8 }
   0xd   : > { %p191_p10 = scmp.lt.s32.totalorder (!%p166_p9), %s1462_s19, 1  ;;  %v1405_v0 = vmov (!%p166_p9), 0.0   ;;  %vm252_vm0 = vcmask (!%p166_p9), 1043456   ;;  %s1406_s6 = smov (!%p166_p9), 127   ;;  %vm248_vm1 = vcmask (!%p166_p9), 31744   ;;  %v1243_v3 = vld [vmem:[%s1666_s1 + $0x20] sm:$0xff] (!%p166_p9)  ;;  %v204_v6 = vlaneseq (!%p166_p9) }
   0xe   : > { %169 = sbr.rel (%p166_p9) target bundleno = 408 (0x198), region = 36  ;;  %695 = vmatprep.mubr.f32.mxu0 (!%p166_p9), %v1405_v0  ;;  %323 = vmatprep.mubr.f32.mxu1 (!%p166_p9), %v1405_v0  ;;  %s1407_s7 = smov (!%p166_p9), 16   ;;  %v1412_v4 = vmov (!%p166_p9), 0   ;;  %v1128_v5 = vld [vmem:[%s1667_s2] sm:$0xff] (!%p166_p9)  ;;  %v1226_v33 = vld [vmem:[%s1666_s1 + $0x8] sm:$0xff] (!%p166_p9)  ;;  %v1253_v54 = vld [vmem:[%s1666_s1 + $0x30] sm:$0xff] (!%p166_p9) }
   0xf   : > { %s1408_s10 = smov (!%p166_p9), 17   ;;  %s1409_s11 = smov (!%p166_p9), 113   ;;  %1339 = vset.pattern.permute.xlu0 (!%p166_p9), %v1412_v4  ;;  %v212_v7 = vshrl.u32 (!%p166_p9), %v204_v6, 7  ;;  %v1506_v8 = vand.u32 (!%p166_p9), 127, %v204_v6  ;;  %v1248_v34 = vld [vmem:[%s1666_s1 + $0x28] sm:$0xff] (!%p166_p9)  ;;  %v223_v53 = vld [vmem:[%s1666_s1] sm:$0xff] (!%p166_p9) }
  0x10   : > { %s1410_s12 = smov (!%p166_p9), 15   ;;  %s1411_s13 = smov (!%p166_p9), 112   ;;  %v1247_v11 = vld [vmem:[%s1668_s3 + $0x5] ss:$8 sm:$0x3] (!%p166_p9) }
  0x11   : > { %s1413_s14 = smov (!%p166_p9), 1   ;;  %s1414_s20 = smov (!%p166_p9), 111   ;;  %v1508_v9 = vsub.s32 (!%p166_p9), 0, %v212_v7  ;;  %v1510_v10 = vsub.s32 (!%p166_p9), 1, %v212_v7  ;;  %vm708_vm2 = vcmp.lt.s32.totalorder (!%p166_p9), %v1506_v8, 127  ;;  %vm228_vm3 = vcmp.lt.s32.totalorder (!%p166_p9), %v1506_v8, 16 }
  0x12   : > { %v1225_v12 = vld [vmem:[%s1668_s3 + $0x1] ss:$8 sm:$0x3] (!%p166_p9)  ;;  %v209_v15 = vld [vmem:[%s1668_s3] ss:$8 sm:$0x3] (!%p166_p9) }
  0x13   : > { %v717_v16 = vrot.slane (!%p166_p9), %v1247_v11, %v1508_v9  ;;  %v721_v17 = vrot.slane (!%p166_p9), %v1247_v11, %v1510_v10  ;;  %v237_v18 = vrot.slane (!%p166_p9), %v1225_v12, %v1508_v9  ;;  %v241_v19 = vrot.slane (!%p166_p9), %v1225_v12, %v1510_v10  ;;  %v1252_v32 = vld [vmem:[%s1668_s3 + $0x6] ss:$8 sm:$0x3] (!%p166_p9)  ;;  %v1233_v43 = vld [vmem:[%s1668_s3 + $0x2] ss:$8 sm:$0x3] (!%p166_p9) }
  0x14   : > { %vm206_vm4 = vcmp.lt.s32.totalorder (!%p166_p9), %v1506_v8, 17  ;;  %v214_v22 = vrot.slane (!%p166_p9), %v209_v15, %v1508_v9  ;;  %v218_v23 = vrot.slane (!%p166_p9), %v209_v15, %v1510_v10  ;;  %v823_v39 = vrot.slane (!%p166_p9), %v1252_v32, %v1508_v9  ;;  %v1257_v52 = vld [vmem:[%s1668_s3 + $0x7] ss:$8 sm:$0x3] (!%p166_p9)  ;;  %s188_s22 = sand.u32 (!%p166_p9), 1, %s1395_s16   ;;  %s1415_s8 = smov (!%p166_p9), [#allocation2]  }
  0x15   : > { %s192_s27 = scalar_select %p191_p10, %s1462_s19, 1  ;;  %vm814_vm5 = vcmp.lt.s32.totalorder %v1506_v8, 113  ;;  %v827_v42 = vrot.slane %v1252_v32, %v1510_v10  ;;  %vm414_vm6 = vcmp.lt.s32.totalorder %v1506_v8, 15  ;;  %v423_v50 = vrot.slane %v1233_v43, %v1508_v9  ;;  %v1238_v63 = vld [vmem:[%s1668_s3 + $0x3] ss:$8 sm:$0x3] }
  0x16   : > { %v427_v51 = vrot.slane %v1233_v43, %v1510_v10  ;;  %v929_v59 = vrot.slane %v1257_v52, %v1508_v9  ;;  %vm920_vm7 = vcmp.lt.s32.totalorder %v1506_v8, 112  ;;  %v933_v62 = vrot.slane %v1257_v52, %v1510_v10  ;;  %v1262_v12 = vld [vmem:[%s1668_s3 + $0x10] ss:$8 sm:$0x3]  ;;  %s1222_s23 = sshll.u32 %s188_s22, 4  ;;  %s1345_s9 = sshll.u32 %s1415_s8, 4  ;;  %s1346_s9 = int_to_ptr.vmem [resolvable:$false] %s1345_s9 }
  0x17   : > { %s1272_s28 = sshll.u32 %s192_s27, 3  ;;  %vm520_vm8 = vcmp.lt.s32.totalorder %v1506_v8, 1  ;;  %v529_v7 = vrot.slane %v1238_v63, %v1508_v9  ;;  %v533_v11 = vrot.slane %v1238_v63, %v1510_v10  ;;  %vm1026_vm9 = vcmp.lt.s32.totalorder %v1506_v8, 111  ;;  %v1239_v8 = vld [vmem:[%s1666_s1 + $0x18] sm:$0xff]  ;;  %s1273_s27 = sshll.u32 %s1462_s19, 8 }
  0x18   : > { %s195_s5 = scalar_lea.vmem %s1665_s0, %s1272_s28  ;;  %s190_s28 = scalar_lea.vmem [#allocation2], %s1222_s23 }
  0x19   : > { %v196_v1 = vld [vmem:[%s195_s5] sm:$0xff]  ;;  %s1159_s29 = sshll.u32 %s190_s28, 4  ;;  %s1145_s19 = scalar_lea.sflag [#allocation3], %s188_s22  ;;  %s1625_s29 = int_to_ptr.vmem [resolvable:$true] %s1159_s29 }
  0x1a   : > { %704 = vrot.lane.b32.xlu1 %v196_v1, %s1406_s6  ;;  %224 = vrot.lane.b32.xlu0 %v196_v1, %s1407_s7  ;;  %v198_v2 = vcombine.high %v196_v1, %v196_v1  ;;  %p1348_p0 = scmp.lt.s32.totalorder %s1625_s29, %s1346_s9 }
  0x1c   : > { %1244 = vmatprep.subr.msk.mxu0 %vm252_vm0, %v198_v2 }
  0x1d   : > { %1245 = vmatpush1.msk.msra.mxu0 %vm252_vm0, %v196_v1 }
  0x1e   : > { %706 = vrot.lane.b32.xlu1 %v198_v2, %s1406_s6  ;;  %226 = vrot.lane.b32.xlu0 %v198_v2, %s1407_s7  ;;  %s1623_s6 = scalar_lea.hbm %s1669_s4, %s1273_s27  ;;  %s1341_s7 = scalar_lea.vmem %s1625_s29, 256 }
  0x1f   : > { %1246 = vmatmul.mubr.msk.f32.vlgmr.msra.gmra.mrb[0].mxu0 %vm248_vm1, %v1243_v3  ;;  %p1342_p11 = scmp.ne.s32.totalorder %s1625_s29, %s1341_s7 }
  0x20   : > { %801 = vmatprep.mubr.f32.mxu0 %v1405_v0 }
  0x21   : > { %p1343_p12 = pnand %p1342_p11, %p1479_p5 }
  0x22   : > { %202 = vrot.lane.b32.xlu1 %v198_v2, %s1408_s10  ;;  %200 = vrot.lane.b32.xlu0 %v196_v1, %s1408_s10  ;;  %s1347_s10 = scalar_lea.vmem %s1346_s9, 512 }
  0x23   : > { %p1344_p13 = pneg %p1343_p12  ;;  %p1349_p1 = scmp.lt.s32.totalorder %s1347_s10, %s1341_s7 }
  0x25   : > { %p1350_p2 = por %p1349_p1, %p1348_p0 }
  0x26   : > { %812 = vrot.lane.b32.xlu1 %v198_v2, %s1409_s11  ;;  %810 = vrot.lane.b32.xlu0 %v196_v1, %s1409_s11 }
  0x27   : > { %p1351_p3 = pnand %p1350_p2, %p1344_p13 }
  0x2a   : > { %412 = vrot.lane.b32.xlu1 %v198_v2, %s1410_s12  ;;  %410 = vrot.lane.b32.xlu0 %v196_v1, %s1410_s12 }
  0x2e   : > { %918 = vrot.lane.b32.xlu1 %v198_v2, %s1411_s13  ;;  %916 = vrot.lane.b32.xlu0 %v196_v1, %s1411_s13 }
  0x32   : > { %518 = vrot.lane.b32.xlu1 %v198_v2, %s1413_s14  ;;  %516 = vrot.lane.b32.xlu0 %v196_v1, %s1413_s14 }
  0x36   : > { %1024 = vrot.lane.b32.xlu1 %v198_v2, %s1414_s20  ;;  %1022 = vrot.lane.b32.xlu0 %v196_v1, %s1414_s20 }
  0x3a   : > { %1131 = vperm.xlu0 %1339, %v1128_v5  }
  0x8c   : > { %v705_v13 = vpop.permute.xlu1 %704  ;;  %v225_v14 = vpop.permute.xlu0 %224 }
  0x90   : > { %v707_v20 = vpop.permute.xlu1 %706  ;;  %v227_v21 = vpop.permute.xlu0 %226 }
  0x91   : > { %v709_v24 = vsel %vm708_vm2, %v705_v13, %v707_v20  ;;  %v710_v25 = vsel %vm708_vm2, %v707_v20, %v705_v13  ;;  %v229_v26 = vsel %vm228_vm3, %v225_v14, %v227_v21  ;;  %v230_v27 = vsel %vm228_vm3, %v227_v21, %v225_v14  ;;  %v1234_v13 = vld [vmem:[%s1666_s1 + $0x10] sm:$0xff]  ;;  %v1258_v14 = vld [vmem:[%s1666_s1 + $0x38] sm:$0xff] }
  0x92   : > { %v724_v28 = vmul.f32 %v717_v16, %v709_v24  ;;  %v725_v29 = vmul.f32 %v721_v17, %v710_v25  ;;  %v244_v30 = vmul.f32 %v237_v18, %v230_v27  ;;  %v245_v31 = vmul.f32 %v241_v19, %v229_v26 }
  0x93   : > { %v1035_v19 = vrot.slane %v1262_v12, %v1508_v9 }
  0x94   : > { %v203_v35 = vpop.permute.xlu1 %202  ;;  %1227 = vmatprep.subr.msk.mxu1 %vm252_vm0, %v245_v31  ;;  %v201_v36 = vpop.permute.xlu0 %200  ;;  %1249 = vmatprep.subr.msk.mxu0 %vm252_vm0, %v725_v29 }
  0x95   : > { %v207_v37 = vsel %vm206_vm4, %v201_v36, %v203_v35  ;;  %v208_v38 = vsel %vm206_vm4, %v203_v35, %v201_v36  ;;  %1228 = vmatpush1.msk.msra.mxu1 %vm252_vm0, %v244_v30  ;;  %1250 = vmatpush1.msk.msra.mxu0 %vm252_vm0, %v724_v28 }
  0x96   : > { %v221_v40 = vmul.f32 %v214_v22, %v208_v38  ;;  %v222_v41 = vmul.f32 %v218_v23, %v207_v37  ;;  %1229 = vmatmul.mubr.msk.f32.vlgmr.msra.gmra.mrb[0].mxu1 %vm248_vm1, %v1226_v33  ;;  %1251 = vmatmul.mubr.msk.f32.vlgmr.msra.gmra.mrb[0].mxu0 %vm248_vm1, %v1248_v34  ;;  %v1039_v22 = vrot.slane %v1262_v12, %v1510_v10  ;;  %v1263_v10 = vld [vmem:[%s1666_s1 + $0x40] sm:$0xff] }
  0x97   : > { %403 = vmatprep.mubr.f32.mxu1 %v1405_v0  ;;  %907 = vmatprep.mubr.f32.mxu0 %v1405_v0 }
  0x98   : > { %v813_v44 = vpop.permute.xlu1 %812  ;;  %1230 = vmatprep.subr.msk.mxu1 %vm252_vm0, %v222_v41  ;;  %v811_v45 = vpop.permute.xlu0 %810 }
  0x99   : > { %v815_v46 = vsel %vm814_vm5, %v811_v45, %v813_v44  ;;  %v816_v47 = vsel %vm814_vm5, %v813_v44, %v811_v45  ;;  %1231 = vmatpush1.msk.msra.mxu1 %vm252_vm0, %v221_v40 }
  0x9a   : > { %v830_v48 = vmul.f32 %v823_v39, %v815_v46  ;;  %v831_v49 = vmul.f32 %v827_v42, %v816_v47 }
  0x9c   : > { %v413_v55 = vpop.permute.xlu1 %412  ;;  %v411_v56 = vpop.permute.xlu0 %410  ;;  %1254 = vmatprep.subr.msk.mxu0 %vm252_vm0, %v831_v49 }
  0x9d   : > { %v415_v57 = vsel %vm414_vm6, %v411_v56, %v413_v55  ;;  %v416_v58 = vsel %vm414_vm6, %v413_v55, %v411_v56  ;;  %1255 = vmatpush1.msk.msra.mxu0 %vm252_vm0, %v830_v48 }
  0x9e   : > { %v430_v60 = vmul.f32 %v423_v50, %v416_v58  ;;  %v431_v61 = vmul.f32 %v427_v51, %v415_v57  ;;  %1232 = vmatmul.mubr.msk.f32.vlgmr.msra.gmra.mrb[0].mxu1 %vm248_vm1, %v223_v53  ;;  %1256 = vmatmul.mubr.msk.f32.vlgmr.msra.gmra.mrb[0].mxu0 %vm248_vm1, %v1253_v54 }
  0x9f   : > { %507 = vmatprep.mubr.f32.mxu1 %v1405_v0  ;;  %1013 = vmatprep.mubr.f32.mxu0 %v1405_v0 }
  0xa0   : > { %v919_v1 = vpop.permute.xlu1 %918  ;;  %1235 = vmatprep.subr.msk.mxu1 %vm252_vm0, %v431_v61  ;;  %v917_v2 = vpop.permute.xlu0 %916 }
  0xa1   : > { %v921_v3 = vsel %vm920_vm7, %v917_v2, %v919_v1  ;;  %v922_v4 = vsel %vm920_vm7, %v919_v1, %v917_v2  ;;  %1236 = vmatpush1.msk.msra.mxu1 %vm252_vm0, %v430_v60 }
  0xa2   : > { %v936_v5 = vmul.f32 %v929_v59, %v921_v3  ;;  %v937_v6 = vmul.f32 %v933_v62, %v922_v4 }
  0xa4   : > { %v519_v15 = vpop.permute.xlu1 %518  ;;  %v517_v16 = vpop.permute.xlu0 %516  ;;  %1259 = vmatprep.subr.msk.mxu0 %vm252_vm0, %v937_v6 }
  0xa5   : > { %v521_v17 = vsel %vm520_vm8, %v517_v16, %v519_v15  ;;  %v522_v18 = vsel %vm520_vm8, %v519_v15, %v517_v16  ;;  %1260 = vmatpush1.msk.msra.mxu0 %vm252_vm0, %v936_v5 }
  0xa6   : > { %v536_v20 = vmul.f32 %v529_v7, %v522_v18  ;;  %v537_v21 = vmul.f32 %v533_v11, %v521_v17  ;;  %1237 = vmatmul.mubr.msk.f32.vlgmr.msra.gmra.mrb[0].mxu1 %vm248_vm1, %v1234_v13  ;;  %1261 = vmatmul.mubr.msk.f32.vlgmr.msra.gmra.mrb[0].mxu0 %vm248_vm1, %v1258_v14 }
  0xa7   : > { %613 = vmatprep.mubr.f32.mxu1 %v1405_v0  ;;  %1119 = vmatprep.mubr.f32.mxu0 %v1405_v0 }
  0xa8   : > { %v1025_v23 = vpop.permute.xlu1 %1024  ;;  %1240 = vmatprep.subr.msk.mxu1 %vm252_vm0, %v537_v21  ;;  %v1023_v24 = vpop.permute.xlu0 %1022 }
  0xa9   : > { %v1027_v9 = vsel %vm1026_vm9, %v1023_v24, %v1025_v23  ;;  %v1028_v25 = vsel %vm1026_vm9, %v1025_v23, %v1023_v24  ;;  %1241 = vmatpush1.msk.msra.mxu1 %vm252_vm0, %v536_v20 }
  0xaa   : > { %v1042_v26 = vmul.f32 %v1035_v19, %v1027_v9  ;;  %v1043_v27 = vmul.f32 %v1039_v22, %v1028_v25 }
  0xac   : > { %1264 = vmatprep.subr.msk.mxu0 %vm252_vm0, %v1043_v27 }
  0xad   : > { %1265 = vmatpush1.msk.msra.mxu0 %vm252_vm0, %v1042_v26 }
  0xae   : > { %1242 = vmatmul.mubr.msk.f32.vlgmr.msra.gmra.mrb[0].mxu1 %vm248_vm1, %v1239_v8  ;;  %1266 = vmatmul.mubr.msk.f32.vlgmr.msra.gmra.mrb[0].mxu0 %vm248_vm1, %v1263_v10 }
  0xb9   : > { %v1132_v0 = vpop.permute.xlu0 %1131 }
 0x181   : > { %v615_v28 = vpop.f32.mrb[0].mxu1  ;;  %v1121_v29 = vpop.f32.mrb[0].mxu0 }
 0x182   : > { %v1274_v30 = vadd.f32 %v1121_v29, %v615_v28  ;;  %v617_v31 = vpop.f32.mrb[1].mxu1  ;;  %v1123_v32 = vpop.f32.mrb[1].mxu0 }
 0x183   : > { %v1275_v33 = vadd.f32 %v1123_v32, %v617_v31 }
 0x184   : > { %v1134_v34 = vadd.f32 %v1274_v30, %v1132_v0 }
 0x185   : > { %v1135_v35 = vadd.f32 %v1275_v33, %v1132_v0 }
 0x186   : > { %vm1136_vm10 = vcmp.gt.f32.partialorder %v1134_v34, 0.0  ;;  %v1138_v36 = vmul.f32 0.1, %v1134_v34 }
 0x187   : > { %vm1137_vm11 = vcmp.gt.f32.partialorder %v1135_v35, 0.0  ;;  %v1139_v37 = vmul.f32 0.1, %v1135_v35 }
 0x188   : > { %v1140_v38 = vsel %vm1136_vm10, %v1134_v34, %v1138_v36 }
 0x189   : > { %v1141_v39 = vsel %vm1137_vm11, %v1135_v35, %v1139_v37  ;;  %1142 = vst [vmem:[%s190_s28] sm:$0xff] %v1140_v38 }
 0x18a   : > { %1143 = vst [vmem:[%s190_s28 + $0x8] sm:$0xff] %v1141_v39 }
 0x18b   : > { %1354 = shalt.err (!%p1351_p3)
}
 0x18c   : > { %s1355_s11 = scalar_lea.hbm %s1623_s6, 256  ;;  %s1359_s14 = scalar_lea.hbm %s1669_s4, 512 }
 0x18d   : > { %p1356_p4 = scmp.ne.s32.totalorder %s1623_s6, %s1355_s11  ;;  %p1360_p9 = scmp.lt.u32.totalorder %s1623_s6, %s1669_s4 }
 0x18e   : > { %p1361_p10 = scmp.lt.u32.totalorder %s1359_s14, %s1355_s11  ;;  %p1363_p12 = scmp.lt.u32.totalorder %s1355_s11, %s1623_s6 }
 0x18f   : > { %p1357_p7 = pnand %p1356_p4, %p1479_p5 }
 0x190   : > { %p1362_p11 = por %p1361_p10, %p1360_p9 }
 0x191   : > { %p1358_p8 = pneg %p1357_p7 }
 0x192   : > { %p1364_p13 = por %p1363_p12, %p1362_p11 }
 0x194   : > { %p1365_p0 = pnand %p1364_p13, %p1358_p8 }
 0x196   : > { %1368 = shalt.err (!%p1365_p0)
}
 0x197   : > { %1290 = dma.vmem_to_hbm [thread:$0]  (%p1479_p5), %s1625_s29, 256, %s1623_s6, %s1145_s19  }
 0x198 PF: > { %p1296_p1 = scmp.ge.s32.totalorder %s1403_s18, 2  ;;  %s1171_s23 = sand.u32 1, %s1391_s15  }
 0x199   : > { %s1172_s27 = scalar_lea.sflag [#allocation3], %s1171_s23 }
 0x19a   : > { %p1293_p2 = pnand %p1296_p1, %p1483_p6 }
 0x19c   : > { %1386 = dma.done.wait (!%p1293_p2), %s1172_s27, 256  }
 0x19d   : > { %1388 = vsyncadd (!%p1293_p2), %s1172_s27, 4294967040  ;;  %p14_p3 = scmp.ge.s32.totalorder %s1466_s21, 4   ;;  %s1672_s15 = smov %s1395_s16 }
 0x19e   : > { %s1673_s16 = smov %s1399_s17  ;;  %s1674_s17 = smov %s1477_s24 }
 0x19f   : > { %s1675_s18 = smov %s1466_s21  ;;  %16 = sbr.rel (!%p14_p3) target bundleno = 3 (0x3), region = 86 }
 0x1a6   :  { %1177 = vsyncpa [#allocation3], 1 }
 0x1a7   :  { %1179 = vsyncpa [#allocation3 + $0x1], 1 }

</bundles_post_ra>
